<compile_context>
chip_gen: v6e
topology: v6e:2x2x1
jax: 0.10.0
libtpu: 0.0.40
codegen_flags: <defaults>
</compile_context>

<pallas_src>
import functools
import math

import jax
import jax.numpy as jnp
from jax import lax
from jax.experimental import pallas as pl
from jax.experimental.pallas import tpu as pltpu


def _attn_kernel(x_ref, w_ref, b_ref, mask_ref, o_ref):
    # x_ref: (S_pad, D) f32   (one batch, batch dim squeezed by BlockSpec)
    # w_ref: (D, 2D) = [Wk^T | Wq^T * inv_scale]
    # b_ref: (1, 2D) = [bk | bq * inv_scale]
    # mask_ref: (1, S_pad) additive key mask {0, -1e30}
    # o_ref: (S_pad, D)
    D = w_ref.shape[0]
    x = x_ref[...]                                           # (S_pad, D)

    # Fused K/Q projection: one 2D-wide matmul, no reshapes.
    kq = jnp.dot(x, w_ref[...], preferred_element_type=jnp.float32) + b_ref[...]
    k = kq[:, :D]                                            # (S_pad, D)
    q = kq[:, D:]                                            # already * 1/sqrt(D)

    # scores[i, j] = sum_d q[i, d] * k[j, d]   (no explicit transpose)
    s = lax.dot_general(
        q, k,
        dimension_numbers=(((1,), (1,)), ((), ())),
        preferred_element_type=jnp.float32,
    )                                                        # (S_pad, S_pad)

    # Mask padded key columns (precomputed additive mask, broadcast over rows).
    s = s + mask_ref[...]

    # Numerically stable softmax over keys; rcp on EUP + one Newton step.
    s = s - jnp.max(s, axis=-1, keepdims=True)
    p = jnp.exp(s)
    d = jnp.sum(p, axis=-1, keepdims=True)
    inv = pl.reciprocal(d, approx=True)
    inv = inv * (2.0 - d * inv)                              # Newton refine
    p = p * inv

    # out = softmax(scores) @ v1  (padded key rows of v1 carry ~0 weight)
    o = jnp.dot(p, x, preferred_element_type=jnp.float32)    # (S_pad, D)
    o_ref[...] = o.astype(o_ref.dtype)


@jax.jit
def attention_model(v1, wk, bk, wq, bq):
    """v1: (B, S, D) f32; wk/wq: (D, D) PyTorch (out, in) layout; bk/bq: (D,)."""
    B, S, D = v1.shape
    inv_scale = 1.0 / math.sqrt(float(D))

    # Pad S up to a sublane multiple (8) so in-kernel tiles are aligned.
    S_pad = ((S + 7) // 8) * 8
    v1p = jnp.pad(v1, ((0, 0), (0, S_pad - S), (0, 0))) if S_pad != S else v1

    # Fuse weights: [Wk^T | Wq^T * inv_scale] -> (D, 2D); same for the biases.
    # (All of this prep fuses into the same jit around the pallas_call.)
    w_kq = jnp.concatenate([wk.T, wq.T * inv_scale], axis=1)
    b_kq = jnp.concatenate([bk, bq * inv_scale]).reshape(1, 2 * D)

    # Additive key mask: 0 for real keys, -1e30 for padded key columns.
    mask = jnp.where(jnp.arange(S_pad)[None, :] < S, 0.0, -1e30).astype(jnp.float32)

    grid_spec = pltpu.PrefetchScalarGridSpec(
        num_scalar_prefetch=0,
        grid=(B,),                                           # one batch per step / per core
        in_specs=[
            pl.BlockSpec((None, S_pad, D), lambda b: (b, 0, 0)),   # v1 (padded), batch squeezed
            pl.BlockSpec((D, 2 * D), lambda b: (0, 0)),            # fused W (VMEM-resident)
            pl.BlockSpec((1, 2 * D), lambda b: (0, 0)),            # fused b
            pl.BlockSpec((1, S_pad), lambda b: (0, 0)),            # additive key mask
        ],
        out_specs=pl.BlockSpec((None, S_pad, D), lambda b: (b, 0, 0)),
    )

    out = pl.pallas_call(
        _attn_kernel,
        out_shape=jax.ShapeDtypeStruct((B, S_pad, D), v1.dtype),
        grid_spec=grid_spec,
        compiler_params=pltpu.CompilerParams(
            dimension_semantics=("parallel",)),              # megacore split on v7x
    )(v1p, w_kq, b_kq, mask)

    return out[:, :S, :]


def _reference(v1, wk, bk, wq, bq):
    k = v1 @ wk.T + bk
    q = v1 @ wq.T + bq
    s = jnp.einsum("bqd,bkd->bqk", q, k) / math.sqrt(v1.shape[-1])
    p = jax.nn.softmax(s, axis=-1)
    return jnp.einsum("bqk,bkd->bqd", p, v1)


if __name__ == "__main__":
    B, S, D = 2, 50, 128
    key = jax.random.PRNGKey(0)
    k1, k2, k3, k4, k5 = jax.random.split(key, 5)

    v1 = jax.random.normal(k1, (B, S, D), dtype=jnp.float32)
    # deterministic parameter init (nn.Linear-style uniform bound)
    bound = 1.0 / math.sqrt(D)
    wk = jax.random.uniform(k2, (D, D), jnp.float32, -bound, bound)
    bk = jax.random.uniform(k3, (D,), jnp.float32, -bound, bound)
    wq = jax.random.uniform(k4, (D, D), jnp.float32, -bound, bound)
    bq = jax.random.uniform(k5, (D,), jnp.float32, -bound, bound)

    out = attention_model(v1, wk, bk, wq, bq)
    out = jax.block_until_ready(out)

    ref = _reference(v1, wk, bk, wq, bq)
    assert out.shape == (B, S, D)
    assert jnp.allclose(out, ref, atol=1e-4, rtol=1e-4), \
        float(jnp.max(jnp.abs(out - ref)))
    print("KERNEL_OK")
</pallas_src>

<mosaic_0001>
module attributes {stable_mosaic.version = 11 : i64} {
  func.func @_attn_kernel(%arg0: i32, %arg1: memref<1x56x128xf32, #tpu.memory_space<vmem>>, %arg2: memref<128x256xf32, #tpu.memory_space<vmem>>, %arg3: memref<1x256xf32, #tpu.memory_space<vmem>>, %arg4: memref<1x56xf32, #tpu.memory_space<vmem>>, %arg5: memref<1x56x128xf32, #tpu.memory_space<vmem>>) attributes {dimension_semantics = [#tpu.dimension_semantics<parallel>], iteration_bounds = array<i64: 2>, scalar_prefetch = 0 : i64, scratch_operands = 0 : i64, tpu.core_type = #tpu.core_type<tc>, window_params = [{transform_indices = @transform_0, window_bounds = array<i64: 1, 56, 128>}, {pipeline_mode = #tpu.pipeline_mode<synchronous>, transform_indices = @transform_1, window_bounds = array<i64: 128, 256>}, {pipeline_mode = #tpu.pipeline_mode<synchronous>, transform_indices = @transform_2, window_bounds = array<i64: 1, 256>}, {pipeline_mode = #tpu.pipeline_mode<synchronous>, transform_indices = @transform_3, window_bounds = array<i64: 1, 56>}, {transform_indices = @transform_4, window_bounds = array<i64: 1, 56, 128>}]} {
    %c0 = arith.constant 0 : index
    %c0_0 = arith.constant 0 : index
    %c0_1 = arith.constant 0 : index
    %0 = vector.load %arg1[%c0, %c0_0, %c0_1] : memref<1x56x128xf32, #tpu.memory_space<vmem>>, vector<1x56x128xf32>
    %1 = vector.shape_cast %0 : vector<1x56x128xf32> to vector<56x128xf32>
    %c0_2 = arith.constant 0 : index
    %c0_3 = arith.constant 0 : index
    %2 = vector.load %arg2[%c0_2, %c0_3] : memref<128x256xf32, #tpu.memory_space<vmem>>, vector<128x256xf32>
    %cst = arith.constant dense<0.000000e+00> : vector<56x256xf32>
    %3 = tpu.matmul %1, %2, %cst {dimension_numbers = #tpu.dot_dimension_numbers<[1], [0], [0], [1], [0, 0, 1, 1], [], []>} : vector<56x128xf32>, vector<128x256xf32>, vector<56x256xf32> -> vector<56x256xf32>
    %c0_4 = arith.constant 0 : index
    %c0_5 = arith.constant 0 : index
    %4 = vector.load %arg3[%c0_4, %c0_5] : memref<1x256xf32, #tpu.memory_space<vmem>>, vector<1x256xf32>
    %5 = vector.broadcast %4 : vector<1x256xf32> to vector<56x256xf32>
    %6 = arith.addf %3, %5 : vector<56x256xf32>
    %7 = vector.extract_strided_slice %6 {offsets = [0, 0], sizes = [56, 128], strides = [1, 1]} : vector<56x256xf32> to vector<56x128xf32>
    %8 = vector.extract_strided_slice %6 {offsets = [0, 128], sizes = [56, 128], strides = [1, 1]} : vector<56x256xf32> to vector<56x128xf32>
    %cst_6 = arith.constant dense<0.000000e+00> : vector<56x56xf32>
    %9 = tpu.matmul %8, %7, %cst_6 {dimension_numbers = #tpu.dot_dimension_numbers<[1], [1], [0], [0], [0, 0, 1, 0], [], []>} : vector<56x128xf32>, vector<56x128xf32>, vector<56x56xf32> -> vector<56x56xf32>
    %c0_7 = arith.constant 0 : index
    %c0_8 = arith.constant 0 : index
    %10 = vector.load %arg4[%c0_7, %c0_8] : memref<1x56xf32, #tpu.memory_space<vmem>>, vector<1x56xf32>
    %11 = vector.broadcast %10 : vector<1x56xf32> to vector<56x56xf32>
    %12 = arith.addf %9, %11 : vector<56x56xf32>
    %cst_9 = arith.constant dense<0xFF800000> : vector<56xf32>
    %13 = vector.multi_reduction <maximumf>, %12, %cst_9 [1] : vector<56x56xf32> to vector<56xf32>
    %14 = vector.shape_cast %13 : vector<56xf32> to vector<56x1xf32>
    %15 = vector.broadcast %14 : vector<56x1xf32> to vector<56x56xf32>
    %16 = arith.subf %12, %15 : vector<56x56xf32>
    %17 = math.exp %16 : vector<56x56xf32>
    %cst_10 = arith.constant dense<0.000000e+00> : vector<56xf32>
    %18 = vector.multi_reduction <add>, %17, %cst_10 [1] : vector<56x56xf32> to vector<56xf32>
    %19 = vector.shape_cast %18 : vector<56xf32> to vector<56x1xf32>
    %20 = tpu.reciprocal %19 {approx = true} : vector<56x1xf32> -> vector<56x1xf32>
    %21 = arith.mulf %19, %20 : vector<56x1xf32>
    %cst_11 = arith.constant 2.000000e+00 : f32
    %22 = vector.broadcast %cst_11 : f32 to vector<56x1xf32>
    %23 = arith.subf %22, %21 : vector<56x1xf32>
    %24 = arith.mulf %20, %23 : vector<56x1xf32>
    %25 = vector.broadcast %24 : vector<56x1xf32> to vector<56x56xf32>
    %26 = arith.mulf %17, %25 : vector<56x56xf32>
    %cst_12 = arith.constant dense<0.000000e+00> : vector<56x128xf32>
    %27 = tpu.matmul %26, %1, %cst_12 {dimension_numbers = #tpu.dot_dimension_numbers<[1], [0], [0], [1], [0, 0, 1, 1], [], []>} : vector<56x56xf32>, vector<56x128xf32>, vector<56x128xf32> -> vector<56x128xf32>
    %c0_13 = arith.constant 0 : index
    %c0_14 = arith.constant 0 : index
    %c0_15 = arith.constant 0 : index
    %28 = vector.load %arg5[%c0_13, %c0_14, %c0_15] : memref<1x56x128xf32, #tpu.memory_space<vmem>>, vector<1x56x128xf32>
    %29 = vector.shape_cast %28 : vector<1x56x128xf32> to vector<56x128xf32>
    %30 = vector.shape_cast %27 : vector<56x128xf32> to vector<1x56x128xf32>
    tpu.vector_store %arg5[%c0_13, %c0_14, %c0_15], %30 {strides = array<i32>} : memref<1x56x128xf32, #tpu.memory_space<vmem>>, vector<1x56x128xf32>,
    return
  }
  func.func @transform_0(%arg0: i32) -> (i32, i32, i32) {
    %c0_i32 = arith.constant 0 : i32
    %c0_i32_0 = arith.constant 0 : i32
    %c0_i32_1 = arith.constant 0 : i32
    return %arg0, %c0_i32, %c0_i32_0 : i32, i32, i32
  }
  func.func @transform_1(%arg0: i32) -> (i32, i32) {
    %c0_i32 = arith.constant 0 : i32
    %c0_i32_0 = arith.constant 0 : i32
    %c0_i32_1 = arith.constant 0 : i32
    return %c0_i32, %c0_i32_0 : i32, i32
  }
  func.func @transform_2(%arg0: i32) -> (i32, i32) {
    %c0_i32 = arith.constant 0 : i32
    %c0_i32_0 = arith.constant 0 : i32
    %c0_i32_1 = arith.constant 0 : i32
    return %c0_i32, %c0_i32_0 : i32, i32
  }
  func.func @transform_3(%arg0: i32) -> (i32, i32) {
    %c0_i32 = arith.constant 0 : i32
    %c0_i32_0 = arith.constant 0 : i32
    %c0_i32_1 = arith.constant 0 : i32
    return %c0_i32, %c0_i32_0 : i32, i32
  }
  func.func @transform_4(%arg0: i32) -> (i32, i32, i32) {
    %c0_i32 = arith.constant 0 : i32
    %c0_i32_0 = arith.constant 0 : i32
    %c0_i32_1 = arith.constant 0 : i32
    return %arg0, %c0_i32, %c0_i32_0 : i32, i32, i32
  }
}

</mosaic_0001>

<bundles_post_ra>
// kernel: attention_model.1
= control target key start
LH: loop header
LB: loop body
LE: loop exit
PB: predicated region body
PF: predicated region fallthrough
CT: control target
= control target key end

     0   :  { %s948_s15 = smov 0   ;;  %s1194_s0 = inlined_call_operand.vmem [shape: f32[2,56,128], index: 0, kind: input, shape index: {}]   ;;  %s1195_s1 = inlined_call_operand.vmem [shape: f32[128,256], index: 1, kind: input, shape index: {}]   ;;  %s1196_s2 = inlined_call_operand.vmem [shape: f32[1,256], index: 2, kind: input, shape index: {}]   ;;  %s1197_s3 = inlined_call_operand.vmem [shape: f32[1,56], index: 3, kind: input, shape index: {}]   ;;  %s1198_s4 = inlined_call_operand.vmem [shape: f32[2,56,128], index: 4, kind: output, shape index: {}]  }
   0x1 LB: > { %s745_s16 = sadd.s32 4294967295, %s919_s15   ;;  %p749_p0 = scmp.ge.s32.totalorder %s919_s15, 1  ;;  %s919_s15 = sphi %s948_s15, %s14_s15  }
   0x2   : > { %p162_p1 = scmp.lt.s32.totalorder %s919_s15, 3 }
   0x4   : > { %p163_p2 = pnand %p749_p0, %p162_p1 }
   0x5   : > { %p188_p3 = scmp.lt.s32.totalorder (!%p163_p2), %s745_s16, 1 }
   0x6   : > { %166 = sbr.rel (%p163_p2) target bundleno = 1022 (0x3fe), region = 36 }
   0xb   : > { %v236_v0 = vld [vmem:[%s1195_s1 + $0xf8] sm:$0xff]  ;;  %v235_v1 = vld [vmem:[%s1195_s1 + $0xf0] sm:$0xff]  ;;  %v234_v2 = vld [vmem:[%s1195_s1 + $0xe8] sm:$0xff]  ;;  %v921_v4 = vmov 0.0   ;;  %s1200_s16 = smov (!%p188_p3, %s745_s16), 1  ;;  %vm922_vm0 = vmmov 0   ;;  %v239_v46 = vlaneseq }
   0xc   : > { %249 = vmatprep.subr.mxu0 %v236_v0  ;;  %v233_v3 = vld [vmem:[%s1195_s1 + $0xe0] sm:$0xff]  ;;  %313 = vmatprep.mubr.f32.mxu0 %v921_v4  ;;  %v232_v5 = vld [vmem:[%s1195_s1 + $0xd8] sm:$0xff]  ;;  %v231_v6 = vld [vmem:[%s1195_s1 + $0xd0] sm:$0xff]  ;;  %s874_s21 = smul.u32 56, %s1200_s16  ;;  %vm463_vm1 = vcmask 457728  }
   0xd   : > { %250 = vmatpush1.msra.mxu0 %v235_v1  ;;  %860 = vmatprep.subr.mxu1 %v921_v4  ;;  %v230_v7 = vld [vmem:[%s1195_s1 + $0xc8] sm:$0xff]  ;;  %v229_v8 = vld [vmem:[%s1195_s1 + $0xc0] sm:$0xff]  ;;  %v228_v9 = vld [vmem:[%s1195_s1 + $0xb8] sm:$0xff]  ;;  %v240_v49 = vshrl.u32 %v239_v46, 7 }
   0xe   : > { %251 = vmatprep.subr.mxu0 %v234_v2  ;;  %v227_v10 = vld [vmem:[%s1195_s1 + $0xb0] sm:$0xff]  ;;  %v226_v11 = vld [vmem:[%s1195_s1 + $0xa8] sm:$0xff]  ;;  %v225_v12 = vld [vmem:[%s1195_s1 + $0xa0] sm:$0xff]  ;;  %s192_s6 = scalar_lea.vmem %s1194_s0, %s874_s21  ;;  %813 = vmatprep.mubr.msk.f32.mxu1 %vm922_vm0, %v921_v4  ;;  %s197_s19 = scalar_lea.vmem %s1198_s4, %s874_s21 }
   0xf   : > { %252 = vmatpush1.msra.mxu0 %v233_v3  ;;  %v224_v13 = vld [vmem:[%s1195_s1 + $0x98] sm:$0xff]  ;;  %v223_v14 = vld [vmem:[%s1195_s1 + $0x90] sm:$0xff]  ;;  %v222_v15 = vld [vmem:[%s1195_s1 + $0x88] sm:$0xff]  ;;  %v241_v52 = vsub.s32 0, %v240_v49  ;;  %v245_v63 = vsub.s32 1, %v240_v49 }
  0x10   : > { %253 = vmatprep.subr.mxu0 %v232_v5  ;;  %v221_v16 = vld [vmem:[%s1195_s1 + $0x80] sm:$0xff]  ;;  %v220_v17 = vld [vmem:[%s1195_s1 + $0x78] sm:$0xff]  ;;  %v219_v18 = vld [vmem:[%s1195_s1 + $0x70] sm:$0xff] }
  0x11   : > { %254 = vmatpush1.msra.mxu0 %v231_v6  ;;  %v218_v19 = vld [vmem:[%s1195_s1 + $0x68] sm:$0xff]  ;;  %v217_v20 = vld [vmem:[%s1195_s1 + $0x60] sm:$0xff]  ;;  %v216_v21 = vld [vmem:[%s1195_s1 + $0x58] sm:$0xff] }
  0x12   : > { %255 = vmatprep.subr.mxu0 %v230_v7  ;;  %v215_v22 = vld [vmem:[%s1195_s1 + $0x50] sm:$0xff]  ;;  %v214_v23 = vld [vmem:[%s1195_s1 + $0x48] sm:$0xff]  ;;  %v213_v24 = vld [vmem:[%s1195_s1 + $0x40] sm:$0xff] }
  0x13   : > { %256 = vmatpush1.msra.mxu0 %v229_v8  ;;  %v212_v25 = vld [vmem:[%s1195_s1 + $0x38] sm:$0xff]  ;;  %v211_v26 = vld [vmem:[%s1195_s1 + $0x30] sm:$0xff]  ;;  %v210_v27 = vld [vmem:[%s1195_s1 + $0x28] sm:$0xff] }
  0x14   : > { %257 = vmatprep.subr.mxu0 %v228_v9  ;;  %v209_v28 = vld [vmem:[%s1195_s1 + $0x20] sm:$0xff]  ;;  %v208_v29 = vld [vmem:[%s1195_s1 + $0x18] sm:$0xff]  ;;  %v207_v30 = vld [vmem:[%s1195_s1 + $0x10] sm:$0xff] }
  0x15   : > { %258 = vmatpush1.msra.mxu0 %v227_v10  ;;  %v206_v31 = vld [vmem:[%s1195_s1 + $0x8] sm:$0xff]  ;;  %v205_v32 = vld [vmem:[%s1195_s1] sm:$0xff]  ;;  %v1075_v35 = vld [vmem:[%s192_s6 + $0x10] sm:$0xff] }
  0x16   : > { %259 = vmatprep.subr.mxu0 %v226_v11  ;;  %v1066_v33 = vld [vmem:[%s192_s6] sm:$0xff]  ;;  %v1071_v34 = vld [vmem:[%s192_s6 + $0x8] sm:$0xff]  ;;  %v1079_v36 = vld [vmem:[%s192_s6 + $0x18] sm:$0xff] }
  0x17   : > { %260 = vmatpush1.msra.mxu0 %v225_v12  ;;  %v1083_v37 = vld [vmem:[%s192_s6 + $0x20] sm:$0xff]  ;;  %v1087_v38 = vld [vmem:[%s192_s6 + $0x28] sm:$0xff]  ;;  %v1091_v39 = vld [vmem:[%s192_s6 + $0x30] sm:$0xff] }
  0x18   : > { %261 = vmatprep.subr.mxu0 %v224_v13  ;;  %v237_v53 = vld [vmem:[%s1196_s2] sm:$0x3] }
  0x19   : > { %262 = vmatpush1.msra.mxu0 %v223_v14  ;;  %v242_v56 = vrot.slane %v237_v53, %v241_v52  ;;  %v246_v1 = vrot.slane %v237_v53, %v245_v63  ;;  %v752_v12 = vld [vmem:[%s1197_s3] ss:$0 sm:$0xff] }
  0x1a   : > { %263 = vmatprep.subr.mxu0 %v222_v15 }
  0x1b   : > { %264 = vmatpush1.msra.mxu0 %v221_v16 }
  0x1c   : > { %265 = vmatprep.subr.mxu0 %v220_v17 }
  0x1d   : > { %266 = vmatpush1.msra.mxu0 %v219_v18 }
  0x1e   : > { %267 = vmatprep.subr.mxu0 %v218_v19 }
  0x1f   : > { %268 = vmatpush1.msra.mxu0 %v217_v20 }
  0x20   : > { %269 = vmatprep.subr.mxu0 %v216_v21 }
  0x21   : > { %270 = vmatpush1.msra.mxu0 %v215_v22 }
  0x22   : > { %271 = vmatprep.subr.mxu0 %v214_v23 }
  0x23   : > { %272 = vmatpush1.msra.mxu0 %v213_v24 }
  0x24   : > { %273 = vmatprep.subr.mxu0 %v212_v25 }
  0x25   : > { %274 = vmatpush1.msra.mxu0 %v211_v26 }
  0x26   : > { %275 = vmatprep.subr.mxu0 %v210_v27 }
  0x27   : > { %276 = vmatpush1.msra.mxu0 %v209_v28 }
  0x28   : > { %277 = vmatprep.subr.mxu0 %v208_v29 }
  0x29   : > { %278 = vmatpush1.msra.mxu0 %v207_v30 }
  0x2a   : > { %279 = vmatprep.subr.mxu0 %v206_v31 }
  0x2b   : > { %280 = vmatpush1.msra.mxu0 %v205_v32 }
  0x2c   : > { %314 = vmatmul.mubr.f32.vlgmr.msra.gmra.mxu0 %v1066_v33  ;;  %790 = vmatprep.subr.mxu0 %v921_v4 }
  0x2d   : > { %319 = vmatprep.mubr.f32.mxu0 %v921_v4 }
  0x30   : > { %320 = vmatmul.mubr.f32.gmra.mxu0 %v1071_v34 }
  0x31   : > { %325 = vmatprep.mubr.f32.mxu0 %v921_v4 }
  0x34   : > { %326 = vmatmul.mubr.f32.gmra.mxu0 %v1075_v35 }
  0x35   : > { %331 = vmatprep.mubr.f32.mxu0 %v921_v4 }
  0x38   : > { %332 = vmatmul.mubr.f32.gmra.mxu0 %v1079_v36 }
  0x39   : > { %337 = vmatprep.mubr.f32.mxu0 %v921_v4 }
  0x3c   : > { %338 = vmatmul.mubr.f32.gmra.mxu0 %v1083_v37 }
  0x3d   : > { %343 = vmatprep.mubr.f32.mxu0 %v921_v4 }
  0x40   : > { %344 = vmatmul.mubr.f32.gmra.mxu0 %v1087_v38 }
  0x41   : > { %349 = vmatprep.mubr.f32.mxu0 %v921_v4 }
  0x44   : > { %350 = vmatmul.mubr.f32.gmra.mxu0 %v1091_v39 }
  0x45   : > { %804 = vmatprep.mubr.msk.f32.mxu0 %vm922_vm0, %v921_v4 }
  0xec   : > { %v315_v40 = vpop.f32.mrf.mxu0 }
  0xed   : > { %v316_v2 = vadd.f32 %v315_v40, %v242_v56 }
  0xee   : > { %v317_v41 = vpop.f32.mrf.mxu0 }
  0xef   : > { %v318_v3 = vadd.f32 %v317_v41, %v246_v1 }
  0xf0   : > { %v321_v42 = vpop.f32.mrf.mxu0 }
  0xf1   : > { %v322_v0 = vadd.f32 %v321_v42, %v242_v56 }
  0xf2   : > { %v323_v43 = vpop.f32.mrf.mxu0 }
  0xf3   : > { %v324_v6 = vadd.f32 %v323_v43, %v246_v1 }
  0xf4   : > { %v327_v44 = vpop.f32.mrf.mxu0 }
  0xf5   : > { %v328_v62 = vadd.f32 %v327_v44, %v242_v56 }
  0xf6   : > { %v1098_v45 = vpop.f32.mrf.mxu0 }
  0xf7   : > { %v330_v8 = vadd.f32 %v1098_v45, %v246_v1 }
  0xf8   : > { %v333_v47 = vpop.f32.mrf.mxu0 }
  0xf9   : > { %v334_v61 = vadd.f32 %v333_v47, %v242_v56 }
  0xfa   : > { %v335_v48 = vpop.f32.mrf.mxu0 }
  0xfb   : > { %v336_v5 = vadd.f32 %v335_v48, %v246_v1 }
  0xfc   : > { %v339_v50 = vpop.f32.mrf.mxu0 }
  0xfd   : > { %v340_v60 = vadd.f32 %v339_v50, %v242_v56 }
  0xfe   : > { %v341_v51 = vpop.f32.mrf.mxu0 }
  0xff   : > { %v342_v7 = vadd.f32 %v341_v51, %v246_v1 }
 0x100   : > { %v345_v54 = vpop.f32.mrf.mxu0 }
 0x101   : > { %v346_v59 = vadd.f32 %v345_v54, %v242_v56 }
 0x102   : > { %v347_v55 = vpop.f32.mrf.mxu0 }
 0x103   : > { %v348_v9 = vadd.f32 %v347_v55, %v246_v1 }
 0x104   : > { %v351_v57 = vpop.f32.mrf.mxu0 }
 0x105   : > { %v352_v58 = vadd.f32 %v351_v57, %v242_v56 }
 0x106   : > { %v353_v10 = vpop.f32.mrf.mxu0 }
 0x107   : > { %791 = vmatpush3.xpose.msra.mxu0 %v352_v58  ;;  %867 = vmatpush3.xpose.msra.mxu1 %v352_v58  ;;  %v354_v11 = vadd.f32 %v353_v10, %v246_v1 }
 0x108   : > { %792 = vmatprep.subr.mxu0 %v921_v4  ;;  %861 = vmatprep.subr.mxu1 %v921_v4 }
 0x10b   : > { %793 = vmatpush3.xpose.msra.mxu0 %v346_v59  ;;  %868 = vmatpush3.xpose.msra.mxu1 %v346_v59 }
 0x10c   : > { %794 = vmatprep.subr.mxu0 %v921_v4  ;;  %862 = vmatprep.subr.mxu1 %v921_v4 }
 0x10f   : > { %795 = vmatpush3.xpose.msra.mxu0 %v340_v60  ;;  %869 = vmatpush3.xpose.msra.mxu1 %v340_v60 }
 0x110   : > { %796 = vmatprep.subr.mxu0 %v921_v4  ;;  %863 = vmatprep.subr.mxu1 %v921_v4 }
 0x113   : > { %797 = vmatpush3.xpose.msra.mxu0 %v334_v61  ;;  %870 = vmatpush3.xpose.msra.mxu1 %v334_v61 }
 0x114   : > { %798 = vmatprep.subr.mxu0 %v921_v4  ;;  %864 = vmatprep.subr.mxu1 %v921_v4 }
 0x117   : > { %799 = vmatpush3.xpose.msra.mxu0 %v328_v62  ;;  %871 = vmatpush3.xpose.msra.mxu1 %v328_v62 }
 0x118   : > { %800 = vmatprep.subr.mxu0 %v921_v4  ;;  %865 = vmatprep.subr.mxu1 %v921_v4 }
 0x11b   : > { %801 = vmatpush3.xpose.msra.mxu0 %v322_v0  ;;  %872 = vmatpush3.xpose.msra.mxu1 %v322_v0 }
 0x11c   : > { %802 = vmatprep.subr.mxu0 %v921_v4  ;;  %866 = vmatprep.subr.mxu1 %v921_v4 }
 0x11f   : > { %803 = vmatpush3.xpose.msra.mxu0 %v316_v2  ;;  %873 = vmatpush3.xpose.msra.mxu1 %v316_v2 }
 0x120   : > { %825 = vmatprep.subr.mxu1 %v921_v4 }
 0x122   : > { %805 = vmatmul.mubr.f32.vlgmr.msra.gmra.mxu0 %v318_v3  ;;  %814 = vmatmul.mubr.f32.vlgmr.msra.gmra.mxu1 %v336_v5 }
 0x123   : > { %807 = vmatprep.mubr.msk.f32.mxu0 %vm922_vm0, %v921_v4  ;;  %816 = vmatprep.mubr.msk.f32.mxu1 %vm922_vm0, %v921_v4 }
 0x124   : > { %826 = vmatpush3.msra.mxu1 %v1091_v39 }
 0x125   : > { %827 = vmatprep.subr.mxu1 %v921_v4 }
 0x126   : > { %808 = vmatmul.mubr.f32.gmra.mxu0 %v324_v6  ;;  %817 = vmatmul.mubr.f32.gmra.mxu1 %v342_v7 }
 0x127   : > { %810 = vmatprep.mubr.msk.f32.mxu0 %vm922_vm0, %v921_v4  ;;  %819 = vmatprep.mubr.msk.f32.mxu1 %vm922_vm0, %v921_v4 }
 0x128   : > { %828 = vmatpush3.msra.mxu1 %v1087_v38 }
 0x129   : > { %829 = vmatprep.subr.mxu1 %v921_v4 }
 0x12a   : > { %811 = vmatmul.mubr.f32.gmra.mxu0 %v330_v8  ;;  %820 = vmatmul.mubr.f32.gmra.mxu1 %v348_v9 }
 0x12b   : > { %822 = vmatprep.mubr.msk.f32.mxu1 %vm922_vm0, %v921_v4  ;;  %830 = vmatpush3.msra.mxu1 %v1083_v37 }
 0x12c   : > { %831 = vmatprep.subr.mxu1 %v921_v4 }
 0x12d   : > { %832 = vmatpush3.msra.mxu1 %v1079_v36 }
 0x12e   : > { %823 = vmatmul.mubr.f32.gmra.mxu1 %v354_v11  ;;  %833 = vmatprep.subr.mxu1 %v921_v4 }
 0x12f   : > { %834 = vmatpush3.msra.mxu1 %v1075_v35  ;;  %839 = vmatprep.mubr.msk.f32.mxu1 %vm922_vm0, %v921_v4 }
 0x130   : > { %835 = vmatprep.subr.mxu1 %v921_v4 }
 0x131   : > { %836 = vmatpush3.msra.mxu1 %v1071_v34 }
 0x132   : > { %837 = vmatprep.subr.mxu1 %v921_v4 }
 0x133   : > { %838 = vmatpush3.msra.mxu1 %v1066_v33 }
 0x1e2   : > { %v429_v13 = vpop.f32.mrf.mxu0  ;;  %v444_v14 = vpop.f32.mrf.mxu1 }
 0x1e3   : > { %v430_v15 = vadd.f32 %v752_v12, %v429_v13  ;;  %v445_v31 = vadd.f32 %v752_v12, %v444_v14 }
 0x1e4   : > { %v806_v16 = vpop.f32.mrf.mxu0  ;;  %v815_v17 = vpop.f32.mrf.mxu1 }
 0x1e5   : > { %v464_v18 = vsel %vm463_vm1, %v430_v15, -inf  ;;  %v473_v39 = vsel %vm463_vm1, %v445_v31, -inf }
 0x1e6   : > { %v449_v19 = vpop.f32.mrf.mxu1  ;;  %465 = vmax.xlane.f32.xlu0 %v464_v18  ;;  %v434_v20 = vpop.f32.mrf.mxu0 }
 0x1e7   : > { %v435_v21 = vadd.f32 %v752_v12, %v434_v20  ;;  %v450_v24 = vadd.f32 %v752_v12, %v449_v19 }
 0x1e8   : > { %v809_v22 = vpop.f32.mrf.mxu0  ;;  %v818_v23 = vpop.f32.mrf.mxu1 }
 0x1e9   : > { %v467_v25 = vsel %vm463_vm1, %v435_v21, -inf  ;;  %v476_v32 = vsel %vm463_vm1, %v450_v24, -inf }
 0x1ea   : > { %v454_v26 = vpop.f32.mrf.mxu1  ;;  %468 = vmax.xlane.f32.xlu0 %v467_v25  ;;  %v439_v27 = vpop.f32.mrf.mxu0 }
 0x1eb   : > { %v440_v28 = vadd.f32 %v752_v12, %v439_v27  ;;  %v455_v37 = vadd.f32 %v752_v12, %v454_v26 }
 0x1ec   : > { %v812_v29 = vpop.f32.mrf.mxu0  ;;  %v821_v30 = vpop.f32.mrf.mxu1 }
 0x1ed   : > { %v470_v33 = vsel %vm463_vm1, %v440_v28, -inf  ;;  %v479_v40 = vsel %vm463_vm1, %v455_v37, -inf }
 0x1ee   : > { %v459_v34 = vpop.f32.mrf.mxu1  ;;  %477 = vmax.xlane.f32.xlu0 %v476_v32  ;;  %471 = vmax.xlane.f32.xlu1 %v470_v33 }
 0x1ef   : > { %v460_v35 = vadd.f32 %v752_v12, %v459_v34 }
 0x1f0   : > { %v824_v36 = vpop.f32.mrf.mxu1 }
 0x1f1   : > { %v482_v38 = vsel %vm463_vm1, %v460_v35, -inf }
 0x1f2   : > { %483 = vmax.xlane.f32.xlu0 %v482_v38  ;;  %474 = vmax.xlane.f32.xlu1 %v473_v39 }
 0x1f6   : > { %480 = vmax.xlane.f32.xlu1 %v479_v40 }
 0x26f   : > { %v466_v41 = vpop.xlane.xlu0 %465 }
 0x270   : > { %v485_v42 = vsub.f32 %v430_v15, %v466_v41 }
 0x272   : > { %v492_v43 = vmul.f32 1.442695, %v485_v42 }
 0x273   : > { %v469_v44 = vpop.xlane.xlu0 %468 }
 0x274   : > { %885 = vpow2.f32 %v492_v43  ;;  %v486_v45 = vsub.f32 %v435_v21, %v469_v44 }
 0x276   : > { %v494_v46 = vmul.f32 1.442695, %v486_v45 }
 0x277   : > { %v478_v47 = vpop.xlane.xlu0 %477  ;;  %v472_v48 = vpop.xlane.xlu1 %471 }
 0x278   : > { %887 = vpow2.f32 %v494_v46  ;;  %v489_v49 = vsub.f32 %v450_v24, %v478_v47  ;;  %v487_v50 = vsub.f32 %v440_v28, %v472_v48 }
 0x27a   : > { %v496_v51 = vmul.f32 1.442695, %v487_v50  ;;  %v500_v52 = vmul.f32 1.442695, %v489_v49 }
 0x27b   : > { %v484_v53 = vpop.xlane.xlu0 %483  ;;  %v475_v54 = vpop.xlane.xlu1 %474 }
 0x27c   : > { %v491_v55 = vsub.f32 %v460_v35, %v484_v53  ;;  %v488_v56 = vsub.f32 %v445_v31, %v475_v54  ;;  %889 = vpow2.f32 %v496_v51 }
 0x27d   : > { %891 = vpow2.f32 %v500_v52 }
 0x27e   : > { %v498_v57 = vmul.f32 1.442695, %v488_v56  ;;  %v504_v58 = vmul.f32 1.442695, %v491_v55 }
 0x27f   : > { %v481_v59 = vpop.xlane.xlu1 %480 }
 0x280   : > { %v490_v60 = vsub.f32 %v455_v37, %v481_v59  ;;  %893 = vpow2.f32 %v498_v57 }
 0x281   : > { %v886_v61 = vpop.eup %885  ;;  %895 = vpow2.f32 %v504_v58 }
 0x282   : > { %v502_v62 = vmul.f32 1.442695, %v490_v60  ;;  %v506_v63 = vsel %vm463_vm1, %v886_v61, 0.0 }
 0x283   : > { %507 = vadd.xlane.f32.xlu1 %v506_v63 }
 0x284   : > { %897 = vpow2.f32 %v502_v62 }
 0x285   : > { %v888_v0 = vpop.eup %887 }
 0x286   : > { %v509_v1 = vsel %vm463_vm1, %v888_v0, 0.0 }
 0x287   : > { %510 = vadd.xlane.f32.xlu0 %v509_v1 }
 0x289   : > { %v890_v2 = vpop.eup %889 }
 0x28a   : > { %v512_v3 = vsel %vm463_vm1, %v890_v2, 0.0  ;;  %v1155_v5 = vpop.eup %891 }
 0x28b   : > { %513 = vadd.xlane.f32.xlu1 %v512_v3  ;;  %v518_v7 = vsel %vm463_vm1, %v1155_v5, 0.0 }
 0x28d   : > { %v894_v6 = vpop.eup %893 }
 0x28e   : > { %v515_v8 = vsel %vm463_vm1, %v894_v6, 0.0  ;;  %v1160_v9 = vpop.eup %895 }
 0x28f   : > { %519 = vadd.xlane.f32.xlu1 %v518_v7  ;;  %516 = vadd.xlane.f32.xlu0 %v515_v8  ;;  %v524_v12 = vsel %vm463_vm1, %v1160_v9, 0.0 }
 0x291   : > { %v898_v10 = vpop.eup %897 }
 0x292   : > { %v521_v11 = vsel %vm463_vm1, %v898_v10, 0.0 }
 0x293   : > { %525 = vadd.xlane.f32.xlu1 %v524_v12  ;;  %522 = vadd.xlane.f32.xlu0 %v521_v11 }
 0x30c   : > { %v508_v13 = vpop.xlane.xlu1 %507 }
 0x30d   : > { %899 = vrcp.f32 %v508_v13 }
 0x310   : > { %v511_v14 = vpop.xlane.xlu0 %510 }
 0x311   : > { %901 = vrcp.f32 %v511_v14 }
 0x314   : > { %v514_v15 = vpop.xlane.xlu1 %513 }
 0x315   : > { %903 = vrcp.f32 %v514_v15 }
 0x318   : > { %v517_v16 = vpop.xlane.xlu0 %516  ;;  %v520_v17 = vpop.xlane.xlu1 %519 }
 0x319   : > { %905 = vrcp.f32 %v517_v16 }
 0x31a   : > { %v900_v18 = vpop.eup %899  ;;  %907 = vrcp.f32 %v520_v17 }
 0x31b   : > { %v534_v19 = vmul.f32 %v900_v18, %v508_v13 }
 0x31c   : > { %v523_v21 = vpop.xlane.xlu0 %522  ;;  %v526_v22 = vpop.xlane.xlu1 %525 }
 0x31d   : > { %v541_v20 = vsub.f32 2.0, %v534_v19  ;;  %909 = vrcp.f32 %v523_v21 }
 0x31e   : > { %v902_v23 = vpop.eup %901  ;;  %911 = vrcp.f32 %v526_v22 }
 0x31f   : > { %v548_v24 = vmul.f32 %v900_v18, %v541_v20  ;;  %v535_v25 = vmul.f32 %v902_v23, %v511_v14 }
 0x321   : > { %v555_v26 = vmul.f32 %v886_v61, %v548_v24  ;;  %v542_v27 = vsub.f32 2.0, %v535_v25 }
 0x322   : > { %v904_v28 = vpop.eup %903 }
 0x323   : > { %v549_v29 = vmul.f32 %v902_v23, %v542_v27  ;;  %840 = vmatmul.mubr.msk.f32.vlgmr.msra.gmra.mxu1 %vm463_vm1, %v555_v26  ;;  %v536_v30 = vmul.f32 %v904_v28, %v514_v15 }
 0x324   : > { %842 = vmatprep.mubr.msk.f32.mxu1 %vm922_vm0, %v921_v4 }
 0x325   : > { %v556_v31 = vmul.f32 %v888_v0, %v549_v29  ;;  %v543_v32 = vsub.f32 2.0, %v536_v30 }
 0x326   : > { %v906_v33 = vpop.eup %905 }
 0x327   : > { %843 = vmatmul.mubr.msk.f32.gmra.mxu1 %vm463_vm1, %v556_v31  ;;  %v908_v34 = vpop.eup %907  ;;  %v550_v35 = vmul.f32 %v904_v28, %v543_v32  ;;  %v537_v36 = vmul.f32 %v906_v33, %v517_v16 }
 0x328   : > { %845 = vmatprep.mubr.msk.f32.mxu1 %vm922_vm0, %v921_v4  ;;  %v538_v37 = vmul.f32 %v908_v34, %v520_v17 }
 0x329   : > { %v557_v38 = vmul.f32 %v890_v2, %v550_v35  ;;  %v544_v39 = vsub.f32 2.0, %v537_v36 }
 0x32a   : > { %v910_v40 = vpop.eup %909  ;;  %v545_v41 = vsub.f32 2.0, %v538_v37 }
 0x32b   : > { %v912_v42 = vpop.eup %911  ;;  %v551_v43 = vmul.f32 %v906_v33, %v544_v39  ;;  %v539_v44 = vmul.f32 %v910_v40, %v523_v21  ;;  %846 = vmatmul.mubr.msk.f32.gmra.mxu1 %vm463_vm1, %v557_v38 }
 0x32c   : > { %848 = vmatprep.mubr.msk.f32.mxu1 %vm922_vm0, %v921_v4  ;;  %v552_v46 = vmul.f32 %v908_v34, %v545_v41  ;;  %v540_v48 = vmul.f32 %v912_v42, %v526_v22 }
 0x32d   : > { %v558_v45 = vmul.f32 %v894_v6, %v551_v43  ;;  %v546_v47 = vsub.f32 2.0, %v539_v44 }
 0x32e   : > { %v559_v49 = vmul.f32 %v1155_v5, %v552_v46  ;;  %v547_v51 = vsub.f32 2.0, %v540_v48 }
 0x32f   : > { %849 = vmatmul.mubr.msk.f32.gmra.mxu1 %vm463_vm1, %v558_v45  ;;  %v553_v50 = vmul.f32 %v910_v40, %v546_v47 }
 0x330   : > { %851 = vmatprep.mubr.msk.f32.mxu1 %vm922_vm0, %v921_v4  ;;  %v554_v53 = vmul.f32 %v912_v42, %v547_v51 }
 0x331   : > { %v560_v52 = vmul.f32 %v898_v10, %v553_v50 }
 0x332   : > { %v561_v54 = vmul.f32 %v1160_v9, %v554_v53 }
 0x333   : > { %852 = vmatmul.mubr.msk.f32.gmra.mxu1 %vm463_vm1, %v559_v49 }
 0x334   : > { %854 = vmatprep.mubr.msk.f32.mxu1 %vm922_vm0, %v921_v4 }
 0x337   : > { %855 = vmatmul.mubr.msk.f32.gmra.mxu1 %vm463_vm1, %v560_v52 }
 0x338   : > { %857 = vmatprep.mubr.msk.f32.mxu1 %vm922_vm0, %v921_v4 }
 0x33b   : > { %858 = vmatmul.mubr.msk.f32.gmra.mxu1 %vm463_vm1, %v561_v54 }
 0x3e3   : > { %v649_v55 = vpop.f32.mrf.mxu1 }
 0x3e4   : > { %683 = vst [vmem:[%s197_s19] sm:$0xff] %v649_v55 }
 0x3e5   : > { %v841_v56 = vpop.f32.mrf.mxu1 }
 0x3e7   : > { %v654_v57 = vpop.f32.mrf.mxu1 }
 0x3e8   : > { %684 = vst [vmem:[%s197_s19 + $0x8] sm:$0xff] %v654_v57 }
 0x3e9   : > { %v844_v58 = vpop.f32.mrf.mxu1 }
 0x3eb   : > { %v659_v59 = vpop.f32.mrf.mxu1 }
 0x3ec   : > { %685 = vst [vmem:[%s197_s19 + $0x10] sm:$0xff] %v659_v59 }
 0x3ed   : > { %v847_v60 = vpop.f32.mrf.mxu1 }
 0x3ef   : > { %v664_v61 = vpop.f32.mrf.mxu1 }
 0x3f0   : > { %686 = vst [vmem:[%s197_s19 + $0x18] sm:$0xff] %v664_v61 }
 0x3f1   : > { %v850_v4 = vpop.f32.mrf.mxu1 }
 0x3f3   : > { %v669_v62 = vpop.f32.mrf.mxu1 }
 0x3f4   : > { %687 = vst [vmem:[%s197_s19 + $0x20] sm:$0xff] %v669_v62 }
 0x3f5   : > { %v853_v63 = vpop.f32.mrf.mxu1 }
 0x3f7   : > { %v674_v0 = vpop.f32.mrf.mxu1 }
 0x3f8   : > { %688 = vst [vmem:[%s197_s19 + $0x28] sm:$0xff] %v674_v0 }
 0x3f9   : > { %v856_v1 = vpop.f32.mrf.mxu1 }
 0x3fb   : > { %v679_v2 = vpop.f32.mrf.mxu1 }
 0x3fc   : > { %689 = vst [vmem:[%s197_s19 + $0x30] sm:$0xff] %v679_v2 }
 0x3fd   : > { %v859_v3 = vpop.f32.mrf.mxu1 }
 0x3fe PF: > { %s14_s15 = sadd.s32 1, %s919_s15  }
 0x3ff   : > { %p11_p4 = scmp.ge.s32.totalorder %s14_s15, 4  }
 0x401   :  { %13 = sbr.rel (!%p11_p4) target bundleno = 1 (0x1), region = 66 }

</bundles_post_ra>
